<compile_context>
chip_gen: v7x
topology: tpu7x:2x2x1
jax: 0.10.0
libtpu: 0.0.40
codegen_flags: <defaults>
</compile_context>

<pallas_src>
from functools import partial

import jax
import jax.numpy as jnp
from jax.experimental import pallas as pl
from jax.experimental.pallas import tpu as pltpu

_OUT_LANES = 128  # lane-dense packed output: lane 0 = action, lane 1 = log-prob


def _actor_kernel(obs_ref, h_ref,
                  wb_ref, bb_ref,
                  wfeat_ref, bfeat_ref,
                  wc2_ref, bc2_ref,
                  wgate_ref, bgate_ref,
                  lng_ref, lnb_ref,
                  wa_ref, ba_ref,
                  out_ref, hout_ref,
                  *, hidden, comm_dim):
    f32 = jnp.float32
    bf16 = jnp.bfloat16
    H = hidden

    # ---- self.base: nn.Linear(obs_dim, hidden) (obs already bf16, K padded by Mosaic) ----
    feat = jnp.dot(obs_ref[...], wb_ref[...], preferred_element_type=f32) + bb_ref[...]
    feat_b = feat.astype(bf16)

    # ---- fused feat-consuming matmul: [w_c1 | w_ih[H:, :]] packed offline (N = C + 3H) ----
    fused = jnp.dot(feat_b, wfeat_ref[...], preferred_element_type=f32) + bfeat_ref[...]
    enc = jnp.maximum(fused[:, :comm_dim], 0.0)       # comm encoder (ReLU)
    gi_feat = fused[:, comm_dim:]                     # feat @ w_ih[H:, :] + b_ih  (tb, 3H)

    # ---- self.communicate (MAC): approximated comm autoencoder (see TODO at top) ----
    comm = jnp.tanh(jnp.dot(enc.astype(bf16), wc2_ref[...],
                            preferred_element_type=f32) + bc2_ref[...])

    # ---- self.rnn: 1-layer GRU single step (f32 gates) + LayerNorm ----
    h = h_ref[...]                                    # already masked in the wrapper
    # Fused K=2H gate matmul; column blocks: [r | z | n_from_comm | n_from_h].
    gate_in = jnp.concatenate([comm.astype(bf16), h.astype(bf16)], axis=-1)
    gate = jnp.dot(gate_in, wgate_ref[...], preferred_element_type=f32) + bgate_ref[...]
    r = jax.nn.sigmoid(gi_feat[:, :H] + gate[:, :H])
    z = jax.nn.sigmoid(gi_feat[:, H:2 * H] + gate[:, H:2 * H])
    i_n = gi_feat[:, 2 * H:] + gate[:, 2 * H:3 * H]
    h_n = gate[:, 3 * H:]
    n = jnp.tanh(i_n + r * h_n)
    h_new = (1.0 - z) * n + z * h                     # updated rnn_states (pre-LayerNorm)

    mean = jnp.mean(h_new, axis=-1, keepdims=True)
    var = jnp.mean((h_new - mean) ** 2, axis=-1, keepdims=True)
    x_ln = (h_new - mean) * jax.lax.rsqrt(var + 1e-5) * lng_ref[...] + lnb_ref[...]

    # ---- self.act: ACTLayer Categorical head, deterministic mode + log_prob ----
    # Action head is lane-padded offline to 128 columns; padded bias columns are -1e30,
    # so they never win the argmax and their exp() underflows to exactly 0.
    logits = jnp.dot(x_ln.astype(bf16), wa_ref[...], preferred_element_type=f32) + ba_ref[...]
    n_lanes = logits.shape[-1]
    mx = jnp.max(logits, axis=-1, keepdims=True)
    aidx = jax.lax.broadcasted_iota(jnp.int32, logits.shape, 1)
    amax = jnp.min(jnp.where(logits == mx, aidx, n_lanes), axis=-1, keepdims=True)  # argmax
    lse = mx + jnp.log(jnp.sum(jnp.exp(logits - mx), axis=-1, keepdims=True))
    sel = jnp.sum(jnp.where(aidx == amax, logits - lse, 0.0), axis=-1, keepdims=True)

    # lane-dense packed output: lane 0 = action (as f32, exact for small ints), lane 1 = logp
    lanes = jax.lax.broadcasted_iota(jnp.int32, out_ref.shape, 1)
    out_ref[...] = (jnp.where(lanes == 0, amax.astype(f32), 0.0)
                    + jnp.where(lanes == 1, sel, 0.0))
    hout_ref[...] = h_new


def _tiling(batch, cap=1024):
    """Return (tile, padded_batch). Tiles are multiples of 8 sublanes, capped at `cap`
    rows, with >= 2 grid steps whenever the batch is big enough to split (so the
    'parallel' batch axis shards across both v7x TensorCores). Padding waste <= 7 rows
    per tile."""
    b8 = -(-batch // 8) * 8
    if b8 <= 16:
        return b8, b8
    n_tiles = max(2, -(-b8 // cap))
    tb = -(-b8 // (n_tiles * 8)) * 8
    return tb, n_tiles * tb


def _pad_rows(x, b_pad):
    b = x.shape[0]
    if b == b_pad:
        return x
    return jnp.pad(x, ((0, b_pad - b),) + ((0, 0),) * (x.ndim - 1))


@jax.jit
def mac_r_actor_forward(obs, rnn_states, masks, params):
    """obs: (B, obs_dim); rnn_states: (B, recurrent_N=1, hidden); masks: (B, 1)."""
    B, obs_dim = obs.shape
    assert rnn_states.shape[1] == 1, "only recurrent_N == 1 is supported"
    H = params["b_base"].shape[1]
    C = params["w_c2"].shape[0]
    n_pad = params["b_act"].shape[1]
    assert H % 128 == 0 and C % 128 == 0, "hidden / comm_dim must be multiples of 128"

    tb, b_pad = _tiling(B)
    grid = (b_pad // tb,)

    # obs stays un-padded on K (Mosaic pads the MXU internally); bf16 halves its DMA.
    obs_b = _pad_rows(obs.astype(jnp.bfloat16), b_pad)
    # Fold masks into the hidden state here: drops the (tb,1) masks input and makes the
    # aliased hidden-state operand a jit-internal temp (no defensive copy, no donation).
    h_masked = _pad_rows(rnn_states.reshape(B, H).astype(jnp.float32)
                         * masks.astype(jnp.float32), b_pad)

    bmap = lambda i: (i, 0)   # batch-tiled arrays
    wmap = lambda i: (0, 0)   # weights: constant index -> stay resident across grid steps

    ins = (obs_b, h_masked,
           params["w_base"], params["b_base"],
           params["w_feat"], params["b_feat"],
           params["w_c2"], params["b_c2"],
           params["w_gate"], params["b_gate"],
           params["ln_g"], params["ln_b"],
           params["w_act"], params["b_act"])

    in_specs = [
        pl.BlockSpec((tb, obs_dim), bmap),      # obs (bf16, no K pad)
        pl.BlockSpec((tb, H), bmap),            # h * masks (aliased to output 1)
        pl.BlockSpec((obs_dim, H), wmap),       # w_base
        pl.BlockSpec((1, H), wmap),             # b_base
        pl.BlockSpec((H, C + 3 * H), wmap),     # w_feat = [w_c1 | w_ih[H:, :]]
        pl.BlockSpec((1, C + 3 * H), wmap),     # b_feat = [b_c1 | b_ih]
        pl.BlockSpec((C, H), wmap),             # w_c2
        pl.BlockSpec((1, H), wmap),             # b_c2
        pl.BlockSpec((2 * H, 4 * H), wmap),     # w_gate = [[w_ih[:H] r|z|n, 0],[w_hh r|z, 0, w_hh n]]
        pl.BlockSpec((1, 4 * H), wmap),         # b_gate = [b_hh r|z | 0 | b_hh n]
        pl.BlockSpec((1, H), wmap),             # ln_g
        pl.BlockSpec((1, H), wmap),             # ln_b
        pl.BlockSpec((H, n_pad), wmap),         # w_act (lane-padded)
        pl.BlockSpec((1, n_pad), wmap),         # b_act (padded cols = -1e30)
    ]
    out_specs = (pl.BlockSpec((tb, _OUT_LANES), bmap),
                 pl.BlockSpec((tb, H), bmap))

    # Advisory cost estimate so XLA can schedule surrounding RL-loop ops around this call.
    mm_elems = obs_dim * H + H * (C + 3 * H) + C * H + 2 * H * 4 * H + H * n_pad
    flops = 2 * b_pad * mm_elems
    transc = b_pad * (4 * H + n_pad + 2)
    bytes_acc = (2 * mm_elems                                          # bf16 weights
                 + 4 * (H + (C + 3 * H) + H + 4 * H + 2 * H + n_pad)   # f32 biases / LN
                 + b_pad * (2 * obs_dim + 4 * H)                       # inputs
                 + b_pad * (4 * _OUT_LANES + 4 * H))                   # outputs
    cost = pl.CostEstimate(flops=flops, transcendentals=transc, bytes_accessed=bytes_acc)

    packed, h_new = pl.pallas_call(
        partial(_actor_kernel, hidden=H, comm_dim=C),
        out_shape=(jax.ShapeDtypeStruct((b_pad, _OUT_LANES), jnp.float32),
                   jax.ShapeDtypeStruct((b_pad, H), jnp.float32)),
        grid=grid,
        in_specs=in_specs,
        out_specs=out_specs,
        input_output_aliases={1: 1},            # h_masked buffer reused for the new hidden state
        compiler_params=pltpu.CompilerParams(
            dimension_semantics=("parallel",),
            vmem_limit_bytes=32 * 1024 * 1024),
        cost_estimate=cost,
    )(*ins)

    actions = packed[:B, 0:1].astype(jnp.int32)
    logp = packed[:B, 1:2]
    return actions, logp, h_new[:B].reshape(B, 1, H)


# ----------------------------- parameter handling -----------------------------

def _init_params(key, obs_dim, hidden, comm_dim, n_actions):
    """Raw (torch-layout, f32) parameters."""
    ks = jax.random.split(key, 8)

    def w(k, i, o, s=0.1):
        return jax.random.normal(k, (i, o), jnp.float32) * s

    return {
        "w_base": w(ks[0], obs_dim, hidden),
        "b_base": jnp.zeros((1, hidden), jnp.float32),
        "w_c1": w(ks[1], hidden, comm_dim),
        "b_c1": jnp.zeros((1, comm_dim), jnp.float32),
        "w_c2": w(ks[2], comm_dim, hidden),
        "b_c2": jnp.zeros((1, hidden), jnp.float32),
        "w_ih": w(ks[3], 2 * hidden, 3 * hidden),
        "b_ih": w(ks[4], 1, 3 * hidden, 0.01),
        "w_hh": w(ks[5], hidden, 3 * hidden),
        "b_hh": w(ks[6], 1, 3 * hidden, 0.01),
        "ln_g": jnp.ones((1, hidden), jnp.float32),
        "ln_b": jnp.zeros((1, hidden), jnp.float32),
        "w_act": w(ks[7], hidden, n_actions),
        "b_act": jnp.zeros((1, n_actions), jnp.float32),
    }


def _pack_params(raw):
    """Offline packing: bf16 weights, fused feat/gate matrices, lane-padded action head."""
    bf16 = jnp.bfloat16
    f32 = jnp.float32
    H = raw["w_base"].shape[1]
    C = raw["w_c2"].shape[0]
    n_act = raw["w_act"].shape[1]
    assert H % 128 == 0 and C % 128 == 0, "hidden / comm_dim must be multiples of 128"

    # Fused GRU gate weight for input [comm | h]; columns [r | z | n_from_comm | n_from_h].
    wic = raw["w_ih"][:H]                                   # comm half of GRU input weights
    whh = raw["w_hh"]
    zH = jnp.zeros((H, H), f32)
    top = jnp.concatenate([wic[:, :2 * H], wic[:, 2 * H:], zH], axis=1)
    bot = jnp.concatenate([whh[:, :2 * H], zH, whh[:, 2 * H:]], axis=1)
    w_gate = jnp.concatenate([top, bot], axis=0)            # (2H, 4H)
    b_gate = jnp.concatenate([raw["b_hh"][:, :2 * H],
                              jnp.zeros((1, H), f32),
                              raw["b_hh"][:, 2 * H:]], axis=1)

    # Action head lane-padded to a multiple of 128; padded bias columns = -1e30.
    n_pad = ((n_act + 127) // 128) * 128
    w_act = jnp.zeros((H, n_pad), f32).at[:, :n_act].set(raw["w_act"])
    b_act = jnp.full((1, n_pad), -1e30, f32).at[:, :n_act].set(raw["b_act"])

    return {
        "w_base": raw["w_base"].astype(bf16),
        "b_base": raw["b_base"],
        "w_feat": jnp.concatenate([raw["w_c1"], raw["w_ih"][H:]], axis=1).astype(bf16),
        "b_feat": jnp.concatenate([raw["b_c1"], raw["b_ih"]], axis=1),
        "w_c2": raw["w_c2"].astype(bf16),
        "b_c2": raw["b_c2"],
        "w_gate": w_gate.astype(bf16),
        "b_gate": b_gate,
        "ln_g": raw["ln_g"],
        "ln_b": raw["ln_b"],
        "w_act": w_act.astype(bf16),
        "b_act": b_act,
    }


def _ref_forward(obs, rnn_states, masks, p):
    """Pure-JAX reference of the same math (same bf16 matmul / f32 accumulate policy)."""
    f32 = jnp.float32
    mm = lambda x, w: jnp.dot(x.astype(jnp.bfloat16), w.astype(jnp.bfloat16),
                              preferred_element_type=f32)
    feat = mm(obs, p["w_base"]) + p["b_base"]
    enc = jnp.maximum(mm(feat, p["w_c1"]) + p["b_c1"], 0.0)
    comm = jnp.tanh(mm(enc, p["w_c2"]) + p["b_c2"])
    h = rnn_states.reshape(obs.shape[0], -1) * masks
    H = h.shape[-1]
    gi = mm(comm, p["w_ih"][:H]) + mm(feat, p["w_ih"][H:]) + p["b_ih"]
    gh = mm(h, p["w_hh"]) + p["b_hh"]
    r = jax.nn.sigmoid(gi[:, :H] + gh[:, :H])
    z = jax.nn.sigmoid(gi[:, H:2 * H] + gh[:, H:2 * H])
    n = jnp.tanh(gi[:, 2 * H:] + r * gh[:, 2 * H:])
    h_new = (1.0 - z) * n + z * h
    mean = h_new.mean(-1, keepdims=True)
    var = ((h_new - mean) ** 2).mean(-1, keepdims=True)
    x_ln = (h_new - mean) * jax.lax.rsqrt(var + 1e-5) * p["ln_g"] + p["ln_b"]
    logits = mm(x_ln, p["w_act"]) + p["b_act"]
    actions = jnp.argmax(logits, -1, keepdims=True).astype(jnp.int32)
    logsm = jax.nn.log_softmax(logits, -1)
    logp = jnp.take_along_axis(logsm, actions, -1)
    return actions, logp, h_new[:, None, :]


if __name__ == "__main__":
    B, OBS_DIM, HIDDEN, COMM_DIM, N_ACTIONS = 8, 48, 128, 128, 6

    key = jax.random.PRNGKey(0)
    k_obs, k_h, k_p = jax.random.split(key, 3)
    obs = jax.random.normal(k_obs, (B, OBS_DIM), jnp.float32)
    rnn_states = jax.random.normal(k_h, (B, 1, HIDDEN), jnp.float32)
    masks = jnp.ones((B, 1), jnp.float32).at[0, 0].set(0.0)  # one env reset
    raw_params = _init_params(k_p, OBS_DIM, HIDDEN, COMM_DIM, N_ACTIONS)
    params = _pack_params(raw_params)

    actions, action_log_probs, new_rnn_states = jax.block_until_ready(
        mac_r_actor_forward(obs, rnn_states, masks, params))

    ref_a, ref_lp, ref_h = _ref_forward(obs, rnn_states, masks, raw_params)
    assert actions.shape == (B, 1) and action_log_probs.shape == (B, 1)
    assert new_rnn_states.shape == (B, 1, HIDDEN)
    assert jnp.array_equal(actions, ref_a)
    assert jnp.allclose(action_log_probs, ref_lp, atol=2e-3, rtol=2e-3)
    assert jnp.allclose(new_rnn_states, ref_h, atol=2e-3, rtol=2e-3)

    print("KERNEL_OK")
</pallas_src>

<mosaic_0001>
module attributes {stable_mosaic.version = 11 : i64} {
  func.func @_actor_kernel(%arg0: i32, %arg1: memref<8x48xbf16, #tpu.memory_space<vmem>>, %arg2: memref<8x128xf32, #tpu.memory_space<vmem>>, %arg3: memref<48x128xbf16, #tpu.memory_space<vmem>>, %arg4: memref<1x128xf32, #tpu.memory_space<vmem>>, %arg5: memref<128x512xbf16, #tpu.memory_space<vmem>>, %arg6: memref<1x512xf32, #tpu.memory_space<vmem>>, %arg7: memref<128x128xbf16, #tpu.memory_space<vmem>>, %arg8: memref<1x128xf32, #tpu.memory_space<vmem>>, %arg9: memref<256x512xbf16, #tpu.memory_space<vmem>>, %arg10: memref<1x512xf32, #tpu.memory_space<vmem>>, %arg11: memref<1x128xf32, #tpu.memory_space<vmem>>, %arg12: memref<1x128xf32, #tpu.memory_space<vmem>>, %arg13: memref<128x128xbf16, #tpu.memory_space<vmem>>, %arg14: memref<1x128xf32, #tpu.memory_space<vmem>>, %arg15: memref<8x128xf32, #tpu.memory_space<vmem>>, %arg16: memref<8x128xf32, #tpu.memory_space<vmem>>) attributes {dimension_semantics = [#tpu.dimension_semantics<parallel>], iteration_bounds = array<i64: 1>, scalar_prefetch = 0 : i64, scratch_operands = 0 : i64, tpu.core_type = #tpu.core_type<tc>, window_params = [{transform_indices = @transform_0, window_bounds = array<i64: 8, 48>}, {transform_indices = @transform_1, window_bounds = array<i64: 8, 128>}, {pipeline_mode = #tpu.pipeline_mode<synchronous>, transform_indices = @transform_2, window_bounds = array<i64: 48, 128>}, {pipeline_mode = #tpu.pipeline_mode<synchronous>, transform_indices = @transform_3, window_bounds = array<i64: 1, 128>}, {pipeline_mode = #tpu.pipeline_mode<synchronous>, transform_indices = @transform_4, window_bounds = array<i64: 128, 512>}, {pipeline_mode = #tpu.pipeline_mode<synchronous>, transform_indices = @transform_5, window_bounds = array<i64: 1, 512>}, {pipeline_mode = #tpu.pipeline_mode<synchronous>, transform_indices = @transform_6, window_bounds = array<i64: 128, 128>}, {pipeline_mode = #tpu.pipeline_mode<synchronous>, transform_indices = @transform_7, window_bounds = array<i64: 1, 128>}, {pipeline_mode = #tpu.pipeline_mode<synchronous>, transform_indices = @transform_8, window_bounds = array<i64: 256, 512>}, {pipeline_mode = #tpu.pipeline_mode<synchronous>, transform_indices = @transform_9, window_bounds = array<i64: 1, 512>}, {pipeline_mode = #tpu.pipeline_mode<synchronous>, transform_indices = @transform_10, window_bounds = array<i64: 1, 128>}, {pipeline_mode = #tpu.pipeline_mode<synchronous>, transform_indices = @transform_11, window_bounds = array<i64: 1, 128>}, {pipeline_mode = #tpu.pipeline_mode<synchronous>, transform_indices = @transform_12, window_bounds = array<i64: 128, 128>}, {pipeline_mode = #tpu.pipeline_mode<synchronous>, transform_indices = @transform_13, window_bounds = array<i64: 1, 128>}, {transform_indices = @transform_14, window_bounds = array<i64: 8, 128>}, {transform_indices = @transform_15, window_bounds = array<i64: 8, 128>}]} {
    %c0 = arith.constant 0 : index
    %c0_0 = arith.constant 0 : index
    %0 = vector.load %arg1[%c0, %c0_0] : memref<8x48xbf16, #tpu.memory_space<vmem>>, vector<8x48xbf16>
    %c0_1 = arith.constant 0 : index
    %c0_2 = arith.constant 0 : index
    %1 = vector.load %arg3[%c0_1, %c0_2] : memref<48x128xbf16, #tpu.memory_space<vmem>>, vector<48x128xbf16>
    %cst = arith.constant dense<0.000000e+00> : vector<8x128xf32>
    %2 = tpu.matmul %0, %1, %cst {dimension_numbers = #tpu.dot_dimension_numbers<[1], [0], [0], [1], [0, 0, 1, 1], [], []>} : vector<8x48xbf16>, vector<48x128xbf16>, vector<8x128xf32> -> vector<8x128xf32>
    %c0_3 = arith.constant 0 : index
    %c0_4 = arith.constant 0 : index
    %3 = vector.load %arg4[%c0_3, %c0_4] : memref<1x128xf32, #tpu.memory_space<vmem>>, vector<1x128xf32>
    %4 = vector.broadcast %3 : vector<1x128xf32> to vector<8x128xf32>
    %5 = arith.addf %2, %4 : vector<8x128xf32>
    %6 = arith.truncf %5 : vector<8x128xf32> to vector<8x128xbf16>
    %c0_5 = arith.constant 0 : index
    %c0_6 = arith.constant 0 : index
    %7 = vector.load %arg5[%c0_5, %c0_6] : memref<128x512xbf16, #tpu.memory_space<vmem>>, vector<128x512xbf16>
    %cst_7 = arith.constant dense<0.000000e+00> : vector<8x512xf32>
    %8 = tpu.matmul %6, %7, %cst_7 {dimension_numbers = #tpu.dot_dimension_numbers<[1], [0], [0], [1], [0, 0, 1, 1], [], []>} : vector<8x128xbf16>, vector<128x512xbf16>, vector<8x512xf32> -> vector<8x512xf32>
    %c0_8 = arith.constant 0 : index
    %c0_9 = arith.constant 0 : index
    %9 = vector.load %arg6[%c0_8, %c0_9] : memref<1x512xf32, #tpu.memory_space<vmem>>, vector<1x512xf32>
    %10 = vector.broadcast %9 : vector<1x512xf32> to vector<8x512xf32>
    %11 = arith.addf %8, %10 : vector<8x512xf32>
    %12 = vector.extract_strided_slice %11 {offsets = [0, 0], sizes = [8, 128], strides = [1, 1]} : vector<8x512xf32> to vector<8x128xf32>
    %cst_10 = arith.constant 0.000000e+00 : f32
    %13 = vector.broadcast %cst_10 : f32 to vector<8x128xf32>
    %14 = arith.maximumf %12, %13 : vector<8x128xf32>
    %15 = vector.extract_strided_slice %11 {offsets = [0, 128], sizes = [8, 384], strides = [1, 1]} : vector<8x512xf32> to vector<8x384xf32>
    %16 = arith.truncf %14 : vector<8x128xf32> to vector<8x128xbf16>
    %c0_11 = arith.constant 0 : index
    %c0_12 = arith.constant 0 : index
    %17 = vector.load %arg7[%c0_11, %c0_12] : memref<128x128xbf16, #tpu.memory_space<vmem>>, vector<128x128xbf16>
    %cst_13 = arith.constant dense<0.000000e+00> : vector<8x128xf32>
    %18 = tpu.matmul %16, %17, %cst_13 {dimension_numbers = #tpu.dot_dimension_numbers<[1], [0], [0], [1], [0, 0, 1, 1], [], []>} : vector<8x128xbf16>, vector<128x128xbf16>, vector<8x128xf32> -> vector<8x128xf32>
    %c0_14 = arith.constant 0 : index
    %c0_15 = arith.constant 0 : index
    %19 = vector.load %arg8[%c0_14, %c0_15] : memref<1x128xf32, #tpu.memory_space<vmem>>, vector<1x128xf32>
    %20 = vector.broadcast %19 : vector<1x128xf32> to vector<8x128xf32>
    %21 = arith.addf %18, %20 : vector<8x128xf32>
    %22 = math.tanh %21 : vector<8x128xf32>
    %c0_16 = arith.constant 0 : index
    %c0_17 = arith.constant 0 : index
    %23 = vector.load %arg2[%c0_16, %c0_17] : memref<8x128xf32, #tpu.memory_space<vmem>>, vector<8x128xf32>
    %24 = arith.truncf %22 : vector<8x128xf32> to vector<8x128xbf16>
    %25 = arith.truncf %23 : vector<8x128xf32> to vector<8x128xbf16>
    %26 = tpu.concatenate %24, %25 in 1 : vector<8x128xbf16>, vector<8x128xbf16> -> vector<8x256xbf16>
    %c0_18 = arith.constant 0 : index
    %c0_19 = arith.constant 0 : index
    %27 = vector.load %arg9[%c0_18, %c0_19] : memref<256x512xbf16, #tpu.memory_space<vmem>>, vector<256x512xbf16>
    %cst_20 = arith.constant dense<0.000000e+00> : vector<8x512xf32>
    %28 = tpu.matmul %26, %27, %cst_20 {dimension_numbers = #tpu.dot_dimension_numbers<[1], [0], [0], [1], [0, 0, 1, 1], [], []>} : vector<8x256xbf16>, vector<256x512xbf16>, vector<8x512xf32> -> vector<8x512xf32>
    %c0_21 = arith.constant 0 : index
    %c0_22 = arith.constant 0 : index
    %29 = vector.load %arg10[%c0_21, %c0_22] : memref<1x512xf32, #tpu.memory_space<vmem>>, vector<1x512xf32>
    %30 = vector.broadcast %29 : vector<1x512xf32> to vector<8x512xf32>
    %31 = arith.addf %28, %30 : vector<8x512xf32>
    %32 = vector.extract_strided_slice %15 {offsets = [0, 0], sizes = [8, 128], strides = [1, 1]} : vector<8x384xf32> to vector<8x128xf32>
    %33 = vector.extract_strided_slice %31 {offsets = [0, 0], sizes = [8, 128], strides = [1, 1]} : vector<8x512xf32> to vector<8x128xf32>
    %34 = arith.addf %32, %33 : vector<8x128xf32>
    %35 = arith.negf %34 : vector<8x128xf32>
    %36 = math.exp %35 : vector<8x128xf32>
    %cst_23 = arith.constant 1.000000e+00 : f32
    %37 = vector.broadcast %cst_23 : f32 to vector<8x128xf32>
    %38 = arith.addf %37, %36 : vector<8x128xf32>
    %39 = arith.divf %37, %38 : vector<8x128xf32>
    %40 = vector.extract_strided_slice %15 {offsets = [0, 128], sizes = [8, 128], strides = [1, 1]} : vector<8x384xf32> to vector<8x128xf32>
    %41 = vector.extract_strided_slice %31 {offsets = [0, 128], sizes = [8, 128], strides = [1, 1]} : vector<8x512xf32> to vector<8x128xf32>
    %42 = arith.addf %40, %41 : vector<8x128xf32>
    %43 = arith.negf %42 : vector<8x128xf32>
    %44 = math.exp %43 : vector<8x128xf32>
    %cst_24 = arith.constant 1.000000e+00 : f32
    %45 = vector.broadcast %cst_24 : f32 to vector<8x128xf32>
    %46 = arith.addf %45, %44 : vector<8x128xf32>
    %47 = arith.divf %45, %46 : vector<8x128xf32>
    %48 = vector.extract_strided_slice %15 {offsets = [0, 256], sizes = [8, 128], strides = [1, 1]} : vector<8x384xf32> to vector<8x128xf32>
    %49 = vector.extract_strided_slice %31 {offsets = [0, 256], sizes = [8, 128], strides = [1, 1]} : vector<8x512xf32> to vector<8x128xf32>
    %50 = arith.addf %48, %49 : vector<8x128xf32>
    %51 = vector.extract_strided_slice %31 {offsets = [0, 384], sizes = [8, 128], strides = [1, 1]} : vector<8x512xf32> to vector<8x128xf32>
    %52 = arith.mulf %39, %51 : vector<8x128xf32>
    %53 = arith.addf %50, %52 : vector<8x128xf32>
    %54 = math.tanh %53 : vector<8x128xf32>
    %cst_25 = arith.constant 1.000000e+00 : f32
    %55 = vector.broadcast %cst_25 : f32 to vector<8x128xf32>
    %56 = arith.subf %55, %47 : vector<8x128xf32>
    %57 = arith.mulf %56, %54 : vector<8x128xf32>
    %58 = arith.mulf %47, %23 : vector<8x128xf32>
    %59 = arith.addf %57, %58 : vector<8x128xf32>
    %cst_26 = arith.constant dense<0.000000e+00> : vector<8xf32>
    %60 = vector.multi_reduction <add>, %59, %cst_26 [1] : vector<8x128xf32> to vector<8xf32>
    %61 = vector.shape_cast %60 : vector<8xf32> to vector<8x1xf32>
    %cst_27 = arith.constant 1.280000e+02 : f32
    %62 = vector.broadcast %cst_27 : f32 to vector<8x1xf32>
    %63 = arith.divf %61, %62 : vector<8x1xf32>
    %64 = vector.broadcast %63 : vector<8x1xf32> to vector<8x128xf32>
    %65 = arith.subf %59, %64 : vector<8x128xf32>
    %66 = arith.mulf %65, %65 : vector<8x128xf32>
    %cst_28 = arith.constant dense<0.000000e+00> : vector<8xf32>
    %67 = vector.multi_reduction <add>, %66, %cst_28 [1] : vector<8x128xf32> to vector<8xf32>
    %68 = vector.shape_cast %67 : vector<8xf32> to vector<8x1xf32>
    %cst_29 = arith.constant 1.280000e+02 : f32
    %69 = vector.broadcast %cst_29 : f32 to vector<8x1xf32>
    %70 = arith.divf %68, %69 : vector<8x1xf32>
    %71 = vector.broadcast %63 : vector<8x1xf32> to vector<8x128xf32>
    %72 = arith.subf %59, %71 : vector<8x128xf32>
    %cst_30 = arith.constant 9.99999974E-6 : f32
    %73 = vector.broadcast %cst_30 : f32 to vector<8x1xf32>
    %74 = arith.addf %70, %73 : vector<8x1xf32>
    %75 = math.rsqrt %74 : vector<8x1xf32>
    %76 = vector.broadcast %75 : vector<8x1xf32> to vector<8x128xf32>
    %77 = arith.mulf %72, %76 : vector<8x128xf32>
    %c0_31 = arith.constant 0 : index
    %c0_32 = arith.constant 0 : index
    %78 = vector.load %arg11[%c0_31, %c0_32] : memref<1x128xf32, #tpu.memory_space<vmem>>, vector<1x128xf32>
    %79 = vector.broadcast %78 : vector<1x128xf32> to vector<8x128xf32>
    %80 = arith.mulf %77, %79 : vector<8x128xf32>
    %c0_33 = arith.constant 0 : index
    %c0_34 = arith.constant 0 : index
    %81 = vector.load %arg12[%c0_33, %c0_34] : memref<1x128xf32, #tpu.memory_space<vmem>>, vector<1x128xf32>
    %82 = vector.broadcast %81 : vector<1x128xf32> to vector<8x128xf32>
    %83 = arith.addf %80, %82 : vector<8x128xf32>
    %84 = arith.truncf %83 : vector<8x128xf32> to vector<8x128xbf16>
    %c0_35 = arith.constant 0 : index
    %c0_36 = arith.constant 0 : index
    %85 = vector.load %arg13[%c0_35, %c0_36] : memref<128x128xbf16, #tpu.memory_space<vmem>>, vector<128x128xbf16>
    %cst_37 = arith.constant dense<0.000000e+00> : vector<8x128xf32>
    %86 = tpu.matmul %84, %85, %cst_37 {dimension_numbers = #tpu.dot_dimension_numbers<[1], [0], [0], [1], [0, 0, 1, 1], [], []>} : vector<8x128xbf16>, vector<128x128xbf16>, vector<8x128xf32> -> vector<8x128xf32>
    %c0_38 = arith.constant 0 : index
    %c0_39 = arith.constant 0 : index
    %87 = vector.load %arg14[%c0_38, %c0_39] : memref<1x128xf32, #tpu.memory_space<vmem>>, vector<1x128xf32>
    %88 = vector.broadcast %87 : vector<1x128xf32> to vector<8x128xf32>
    %89 = arith.addf %86, %88 : vector<8x128xf32>
    %cst_40 = arith.constant dense<0xFF800000> : vector<8xf32>
    %90 = vector.multi_reduction <maximumf>, %89, %cst_40 [1] : vector<8x128xf32> to vector<8xf32>
    %91 = vector.shape_cast %90 : vector<8xf32> to vector<8x1xf32>
    %92 = tpu.iota {dimensions = array<i32: 1>} : vector<8x128xi32>
    %93 = vector.broadcast %91 : vector<8x1xf32> to vector<8x128xf32>
    %94 = arith.cmpf oeq, %89, %93 : vector<8x128xf32>
    %c128_i32 = arith.constant 128 : i32
    %95 = vector.broadcast %c128_i32 : i32 to vector<8x128xi32>
    %96 = arith.select %94, %92, %95 : vector<8x128xi1>, vector<8x128xi32>
    %cst_41 = arith.constant dense<2147483647> : vector<8xi32>
    %97 = vector.multi_reduction <minsi>, %96, %cst_41 [1] : vector<8x128xi32> to vector<8xi32>
    %98 = vector.shape_cast %97 : vector<8xi32> to vector<8x1xi32>
    %99 = vector.broadcast %91 : vector<8x1xf32> to vector<8x128xf32>
    %100 = arith.subf %89, %99 : vector<8x128xf32>
    %101 = math.exp %100 : vector<8x128xf32>
    %cst_42 = arith.constant dense<0.000000e+00> : vector<8xf32>
    %102 = vector.multi_reduction <add>, %101, %cst_42 [1] : vector<8x128xf32> to vector<8xf32>
    %103 = vector.shape_cast %102 : vector<8xf32> to vector<8x1xf32>
    %104 = math.log %103 : vector<8x1xf32>
    %105 = arith.addf %91, %104 : vector<8x1xf32>
    %106 = vector.broadcast %98 : vector<8x1xi32> to vector<8x128xi32>
    %107 = arith.cmpi eq, %92, %106 : vector<8x128xi32>
    %108 = vector.broadcast %105 : vector<8x1xf32> to vector<8x128xf32>
    %109 = arith.subf %89, %108 : vector<8x128xf32>
    %cst_43 = arith.constant 0.000000e+00 : f32
    %110 = vector.broadcast %cst_43 : f32 to vector<8x128xf32>
    %111 = arith.select %107, %109, %110 : vector<8x128xi1>, vector<8x128xf32>
    %cst_44 = arith.constant dense<0.000000e+00> : vector<8xf32>
    %112 = vector.multi_reduction <add>, %111, %cst_44 [1] : vector<8x128xf32> to vector<8xf32>
    %113 = vector.shape_cast %112 : vector<8xf32> to vector<8x1xf32>
    %114 = tpu.iota {dimensions = array<i32: 1>} : vector<8x128xi32>
    %c0_i32 = arith.constant 0 : i32
    %115 = vector.broadcast %c0_i32 : i32 to vector<8x128xi32>
    %116 = arith.cmpi eq, %114, %115 : vector<8x128xi32>
    %117 = arith.sitofp %98 : vector<8x1xi32> to vector<8x1xf32>
    %cst_45 = arith.constant 0.000000e+00 : f32
    %118 = vector.shape_cast %117 : vector<8x1xf32> to vector<8x1xf32>
    %119 = vector.broadcast %118 : vector<8x1xf32> to vector<8x128xf32>
    %120 = vector.broadcast %cst_45 : f32 to vector<8x128xf32>
    %121 = arith.select %116, %119, %120 : vector<8x128xi1>, vector<8x128xf32>
    %c1_i32 = arith.constant 1 : i32
    %122 = vector.broadcast %c1_i32 : i32 to vector<8x128xi32>
    %123 = arith.cmpi eq, %114, %122 : vector<8x128xi32>
    %cst_46 = arith.constant 0.000000e+00 : f32
    %124 = vector.shape_cast %113 : vector<8x1xf32> to vector<8x1xf32>
    %125 = vector.broadcast %124 : vector<8x1xf32> to vector<8x128xf32>
    %126 = vector.broadcast %cst_46 : f32 to vector<8x128xf32>
    %127 = arith.select %123, %125, %126 : vector<8x128xi1>, vector<8x128xf32>
    %128 = arith.addf %121, %127 : vector<8x128xf32>
    %c0_47 = arith.constant 0 : index
    %c0_48 = arith.constant 0 : index
    %129 = vector.load %arg15[%c0_47, %c0_48] : memref<8x128xf32, #tpu.memory_space<vmem>>, vector<8x128xf32>
    tpu.vector_store %arg15[%c0_47, %c0_48], %128 {strides = array<i32>} : memref<8x128xf32, #tpu.memory_space<vmem>>, vector<8x128xf32>,
    %c0_49 = arith.constant 0 : index
    %c0_50 = arith.constant 0 : index
    %130 = vector.load %arg16[%c0_49, %c0_50] : memref<8x128xf32, #tpu.memory_space<vmem>>, vector<8x128xf32>
    tpu.vector_store %arg16[%c0_49, %c0_50], %59 {strides = array<i32>} : memref<8x128xf32, #tpu.memory_space<vmem>>, vector<8x128xf32>,
    return
  }
  func.func @transform_0(%arg0: i32) -> (i32, i32) {
    %c0_i32 = arith.constant 0 : i32
    %c0_i32_0 = arith.constant 0 : i32
    return %arg0, %c0_i32 : i32, i32
  }
  func.func @transform_1(%arg0: i32) -> (i32, i32) {
    %c0_i32 = arith.constant 0 : i32
    %c0_i32_0 = arith.constant 0 : i32
    return %arg0, %c0_i32 : i32, i32
  }
  func.func @transform_2(%arg0: i32) -> (i32, i32) {
    %c0_i32 = arith.constant 0 : i32
    %c0_i32_0 = arith.constant 0 : i32
    %c0_i32_1 = arith.constant 0 : i32
    return %c0_i32, %c0_i32_0 : i32, i32
  }
  func.func @transform_3(%arg0: i32) -> (i32, i32) {
    %c0_i32 = arith.constant 0 : i32
    %c0_i32_0 = arith.constant 0 : i32
    %c0_i32_1 = arith.constant 0 : i32
    return %c0_i32, %c0_i32_0 : i32, i32
  }
  func.func @transform_4(%arg0: i32) -> (i32, i32) {
    %c0_i32 = arith.constant 0 : i32
    %c0_i32_0 = arith.constant 0 : i32
    %c0_i32_1 = arith.constant 0 : i32
    return %c0_i32, %c0_i32_0 : i32, i32
  }
  func.func @transform_5(%arg0: i32) -> (i32, i32) {
    %c0_i32 = arith.constant 0 : i32
    %c0_i32_0 = arith.constant 0 : i32
    %c0_i32_1 = arith.constant 0 : i32
    return %c0_i32, %c0_i32_0 : i32, i32
  }
  func.func @transform_6(%arg0: i32) -> (i32, i32) {
    %c0_i32 = arith.constant 0 : i32
    %c0_i32_0 = arith.constant 0 : i32
    %c0_i32_1 = arith.constant 0 : i32
    return %c0_i32, %c0_i32_0 : i32, i32
  }
  func.func @transform_7(%arg0: i32) -> (i32, i32) {
    %c0_i32 = arith.constant 0 : i32
    %c0_i32_0 = arith.constant 0 : i32
    %c0_i32_1 = arith.constant 0 : i32
    return %c0_i32, %c0_i32_0 : i32, i32
  }
  func.func @transform_8(%arg0: i32) -> (i32, i32) {
    %c0_i32 = arith.constant 0 : i32
    %c0_i32_0 = arith.constant 0 : i32
    %c0_i32_1 = arith.constant 0 : i32
    return %c0_i32, %c0_i32_0 : i32, i32
  }
  func.func @transform_9(%arg0: i32) -> (i32, i32) {
    %c0_i32 = arith.constant 0 : i32
    %c0_i32_0 = arith.constant 0 : i32
    %c0_i32_1 = arith.constant 0 : i32
    return %c0_i32, %c0_i32_0 : i32, i32
  }
  func.func @transform_10(%arg0: i32) -> (i32, i32) {
    %c0_i32 = arith.constant 0 : i32
    %c0_i32_0 = arith.constant 0 : i32
    %c0_i32_1 = arith.constant 0 : i32
    return %c0_i32, %c0_i32_0 : i32, i32
  }
  func.func @transform_11(%arg0: i32) -> (i32, i32) {
    %c0_i32 = arith.constant 0 : i32
    %c0_i32_0 = arith.constant 0 : i32
    %c0_i32_1 = arith.constant 0 : i32
    return %c0_i32, %c0_i32_0 : i32, i32
  }
  func.func @transform_12(%arg0: i32) -> (i32, i32) {
    %c0_i32 = arith.constant 0 : i32
    %c0_i32_0 = arith.constant 0 : i32
    %c0_i32_1 = arith.constant 0 : i32
    return %c0_i32, %c0_i32_0 : i32, i32
  }
  func.func @transform_13(%arg0: i32) -> (i32, i32) {
    %c0_i32 = arith.constant 0 : i32
    %c0_i32_0 = arith.constant 0 : i32
    %c0_i32_1 = arith.constant 0 : i32
    return %c0_i32, %c0_i32_0 : i32, i32
  }
  func.func @transform_14(%arg0: i32) -> (i32, i32) {
    %c0_i32 = arith.constant 0 : i32
    %c0_i32_0 = arith.constant 0 : i32
    return %arg0, %c0_i32 : i32, i32
  }
  func.func @transform_15(%arg0: i32) -> (i32, i32) {
    %c0_i32 = arith.constant 0 : i32
    %c0_i32_0 = arith.constant 0 : i32
    return %arg0, %c0_i32 : i32, i32
  }
}

</mosaic_0001>

<bundles_post_ra>
// kernel: mac_r_actor_forward.1
= control target key start
LH: loop header
LB: loop body
LE: loop exit
PB: predicated region body
PF: predicated region fallthrough
CT: control target
= control target key end

     0   :  { %21 = vsyncpa [#allocation3], 0  ;;  %s2050_s0 = inlined_call_operand.vmem [shape: bf16[8,48], index: 0, kind: input, shape index: {}]   ;;  %s2051_s1 = inlined_call_operand.vmem [shape: f32[8,128], index: 1, kind: input, shape index: {}, may-alias: {1,15}]   ;;  %s2052_s2 = inlined_call_operand.hbm [shape: bf16[48,128], index: 2, kind: input, shape index: {}]   ;;  %s2053_s3 = inlined_call_operand.vmem [shape: f32[1,128], index: 3, kind: input, shape index: {}]   ;;  %s2054_s4 = inlined_call_operand.hbm [shape: bf16[128,512], index: 4, kind: input, shape index: {}]   ;;  %s2055_s5 = inlined_call_operand.vmem [shape: f32[1,512], index: 5, kind: input, shape index: {}]   ;;  %s2056_s6 = inlined_call_operand.vmem [shape: bf16[128,128], index: 6, kind: input, shape index: {}]   ;;  %s2057_s7 = inlined_call_operand.vmem [shape: f32[1,128], index: 7, kind: input, shape index: {}]   ;;  %s2058_s8 = inlined_call_operand.hbm [shape: bf16[256,512], index: 8, kind: input, shape index: {}]   ;;  %s2059_s9 = inlined_call_operand.vmem [shape: f32[1,512], index: 9, kind: input, shape index: {}]   ;;  %s2060_s10 = inlined_call_operand.vmem [shape: f32[1,128], index: 10, kind: input, shape index: {}]   ;;  %s2061_s11 = inlined_call_operand.vmem [shape: f32[1,128], index: 11, kind: input, shape index: {}]   ;;  %s2062_s12 = inlined_call_operand.hbm [shape: bf16[128,128], index: 12, kind: input, shape index: {}]   ;;  %s2063_s13 = inlined_call_operand.vmem [shape: f32[1,128], index: 13, kind: input, shape index: {}]   ;;  %s2064_s14 = inlined_call_operand.vmem [shape: f32[8,128], index: 14, kind: output, shape index: {0}]   ;;  %s2065_s15 = inlined_call_operand.vmem [shape: f32[8,128], index: 15, kind: output, shape index: {1}, may-alias: {1,15}]  }
   0x1   :  { %22 = vsyncpa [#allocation5], 0 }
   0x2   :  { %23 = vsyncpa [#allocation8], 0  ;;  %s1778_s18 = smov [#allocation4]   ;;  %s1684_s22 = scalar_lea.hbm %s2054_s4, 4096 }
   0x3   :  { %s47_s19 = sshll.u32 %s1778_s18, 4  ;;  %p1685_p0 = scmp.ne.s32.totalorder %s2054_s4, %s1684_s22  ;;  %s48_s19 = int_to_ptr.vmem [resolvable:$true] %s47_s19 }
   0x4   :  { %p1688_p1 = scmp.lt.u32.totalorder %s1684_s22, %s2054_s4 }
   0x6   :  { %p1690_p2 = pnand %p1688_p1, %p1685_p0 }
   0x8   :  { %1693 = shalt.err (!%p1690_p2)
}
   0x9   :  { %s1694_s27 = scalar_lea.vmem %s48_s19, 4096  ;;  %p1699_p4 = scmp.lt.s32.totalorder %s48_s19, %s48_s19 }
   0xa   :  { %p1695_p3 = scmp.ne.s32.totalorder %s48_s19, %s1694_s27  ;;  %p1700_p5 = scmp.lt.s32.totalorder %s1694_s27, %s1694_s27 }
   0xc   :  { %p1701_p6 = por %p1700_p5, %p1699_p4 }
   0xe   :  { %p1702_p7 = pnand %p1701_p6, %p1695_p3 }
  0x10   :  { %1705 = shalt.err (!%p1702_p7)
}
  0x11   :  { %s2066_s28 = smov 256   ;;  %s2067_s29 = smov 16  }
  0x12   :  { %53 = dma.hbm_to_vmem [thread:$0]  %s2054_s4, 4096, %s48_s19, [#allocation5], %s2066_s28, %s2066_s28, %s2067_s29  }
  0x13   :  { %s1781_s17 = smov [#allocation2]   ;;  %s1706_s22 = scalar_lea.hbm %s2052_s2, 384 }
  0x14   :  { %s33_s18 = sshll.u32 %s1781_s17, 4  ;;  %p1707_p8 = scmp.ne.s32.totalorder %s2052_s2, %s1706_s22  ;;  %s34_s18 = int_to_ptr.vmem [resolvable:$true] %s33_s18 }
  0x15   :  { %p1710_p9 = scmp.lt.u32.totalorder %s1706_s22, %s2052_s2 }
  0x17   :  { %p1712_p10 = pnand %p1710_p9, %p1707_p8 }
  0x19   :  { %1715 = shalt.err (!%p1712_p10)
}
  0x1a   :  { %s1716_s27 = scalar_lea.vmem %s34_s18, 384  ;;  %p1721_p12 = scmp.lt.s32.totalorder %s34_s18, %s34_s18 }
  0x1b   :  { %p1717_p11 = scmp.ne.s32.totalorder %s34_s18, %s1716_s27  ;;  %p1722_p13 = scmp.lt.s32.totalorder %s1716_s27, %s1716_s27 }
  0x1d   :  { %p1723_p0 = por %p1722_p13, %p1721_p12 }
  0x1f   :  { %p1724_p1 = pnand %p1723_p0, %p1717_p11 }
  0x21   :  { %1727 = shalt.err (!%p1724_p1)
}
  0x22   :  { %s1782_s4 = smov 64   ;;  %s1783_s19 = smov 4  }
  0x23   :  { %39 = dma.hbm_to_vmem [thread:$0]  %s2052_s2, 384, %s34_s18, [#allocation3], %s1782_s4, %s1782_s4, %s1783_s19  }
  0x24   :  { %s1784_s17 = smov [#allocation6]   ;;  %s1785_s21 = smov [#allocation7]  }
  0x25   :  { %s65_s20 = sshll.u32 %s1784_s17, 4  ;;  %s83_s22 = sshll.u32 %s1785_s21, 4  ;;  %s66_s20 = int_to_ptr.vmem [resolvable:$true] %s65_s20  ;;  %s1899_s22 = int_to_ptr.vmem [resolvable:$true] %s83_s22 }
  0x26   :  { %s1728_s25 = scalar_lea.hbm %s2058_s8, 8192 }
  0x27   :  { %p1729_p2 = scmp.ne.s32.totalorder %s2058_s8, %s1728_s25  ;;  %p1732_p3 = scmp.lt.u32.totalorder %s1728_s25, %s2058_s8 }
  0x29   :  { %p1734_p4 = pnand %p1732_p3, %p1729_p2 }
  0x2b   :  { %1737 = shalt.err (!%p1734_p4)
}
  0x2c   :  { %s1738_s2 = scalar_lea.vmem %s66_s20, 8192  ;;  %p1743_p6 = scmp.lt.s32.totalorder %s66_s20, %s66_s20 }
  0x2d   :  { %p1739_p5 = scmp.ne.s32.totalorder %s66_s20, %s1738_s2  ;;  %p1744_p7 = scmp.lt.s32.totalorder %s1738_s2, %s1738_s2 }
  0x2f   :  { %p1745_p8 = por %p1744_p7, %p1743_p6 }
  0x31   :  { %p1746_p9 = pnand %p1745_p8, %p1739_p5 }
  0x33   :  { %1749 = shalt.err (!%p1746_p9)
}
  0x34   :  { %s2068_s18 = smov 16   ;;  %s2069_s30 = smov 256  }
  0x35   :  { %71 = dma.hbm_to_vmem [thread:$0]  %s2058_s8, 8192, %s66_s20, [#allocation5], %s2069_s30, %s2069_s30, %s2068_s18  }
  0x36   :  { %s1750_s28 = scalar_lea.hbm %s2062_s12, 1024 }
  0x37   :  { %p1751_p10 = scmp.ne.s32.totalorder %s2062_s12, %s1750_s28  ;;  %p1754_p11 = scmp.lt.u32.totalorder %s1750_s28, %s2062_s12 }
  0x39   :  { %p1756_p12 = pnand %p1754_p11, %p1751_p10 }
  0x3b   :  { %1759 = shalt.err (!%p1756_p12)
}
  0x3c   :  { %s1760_s27 = scalar_lea.vmem %s1899_s22, 1024  ;;  %p1765_p0 = scmp.lt.s32.totalorder %s1899_s22, %s1899_s22 }
  0x3d   :  { %p1761_p13 = scmp.ne.s32.totalorder %s1899_s22, %s1760_s27  ;;  %p1766_p1 = scmp.lt.s32.totalorder %s1760_s27, %s1760_s27 }
  0x3f   :  { %p1767_p2 = por %p1766_p1, %p1765_p0 }
  0x41   :  { %p1768_p3 = pnand %p1767_p2, %p1761_p13 }
  0x43   :  { %1771 = shalt.err (!%p1768_p3)
}
  0x44   :  { %89 = dma.hbm_to_vmem [thread:$0]  %s2062_s12, 1024, %s1899_s22, [#allocation8], %s1782_s4, %s1782_s4, %s1783_s19  }
  0x45   :  { %1772 = dma.done.wait [#allocation3], 384  }
  0x46   :  { %1773 = vsyncadd [#allocation3], 4294966912 }
  0x47   :  { %1774 = dma.done.wait [#allocation5], 12288  }
  0x48   :  { %1775 = vsyncadd [#allocation5], 4294955008 }
  0x49   :  { %1776 = dma.done.wait [#allocation8], 1024  }
  0x4a   :  { %1777 = vsyncadd [#allocation8], 4294966272  ;;  %v1786_v0 = vmov 0.0   ;;  %vm1787_vm0 = vmmov 0   ;;  %v1503_v1 = vld [vmem:[#allocation2] sm:$0xff]   ;;  %v1504_v2 = vld [vmem:[#allocation2 + $0x8] sm:$0xff]  }
  0x4b   :  { %1442 = vmatprep.subr.bf16.mxu0 %v1786_v0  ;;  %1448 = vmatprep.mubr.msk.bf16.mxu0 %vm1787_vm0, %v1786_v0  ;;  %v1506_v3 = vld [vmem:[#allocation4 + $0x4] ss:$16 sps:$4 sm:$0xff]   ;;  %v1505_v4 = vld [vmem:[#allocation2 + $0x10] sm:$0xff]   ;;  %v1511_v5 = vld [vmem:[#allocation4] ss:$16 sps:$4 sm:$0xff]   ;;  %vm137_vm1 = vcmask 392192  }
  0x4c   :  { %1443 = vmatpush3.bf16.msra.mxu0 %v1503_v1  ;;  %396 = vmatprep.subr.bf16.mxu1 %v1506_v3  ;;  %v1512_v6 = vld [vmem:[#allocation4 + $0x24] ss:$16 sps:$4 sm:$0xff]   ;;  %v1510_v7 = vld [vmem:[#allocation4 + $0xc] ss:$16 sps:$4 sm:$0xff]   ;;  %v105_v8 = vld [vmem:[%s2050_s0] sm:$0xf] }
  0x4d   :  { %1444 = vmatprep.subr.bf16.mxu0 %v1786_v0  ;;  %397 = vmatpush1.bf16.msra.mxu1 %v1511_v5  ;;  %v1517_v9 = vld [vmem:[#allocation4 + $0x20] ss:$16 sps:$4 sm:$0xff]   ;;  %v1518_v10 = vld [vmem:[#allocation4 + $0x44] ss:$16 sps:$4 sm:$0xff]   ;;  %v1508_v11 = vld [vmem:[#allocation4 + $0x8] ss:$16 sps:$4 sm:$0xff]  }
  0x4e   :  { %398 = vmatprep.subr.bf16.mxu1 %v1512_v6  ;;  %v1516_v12 = vld [vmem:[#allocation4 + $0x2c] ss:$16 sps:$4 sm:$0xff]   ;;  %v1523_v13 = vld [vmem:[#allocation4 + $0x40] ss:$16 sps:$4 sm:$0xff]   ;;  %v1524_v14 = vld [vmem:[#allocation4 + $0x64] ss:$16 sps:$4 sm:$0xff]  }
  0x4f   :  { %v1514_v15 = vld [vmem:[#allocation4 + $0x28] ss:$16 sps:$4 sm:$0xff]   ;;  %v1522_v16 = vld [vmem:[#allocation4 + $0x4c] ss:$16 sps:$4 sm:$0xff]   ;;  %v1529_v17 = vld [vmem:[#allocation4 + $0x60] ss:$16 sps:$4 sm:$0xff]  }
  0x50   :  { %1445 = vmatpush3.bf16.msra.mxu0 %v1504_v2  ;;  %v1530_v18 = vld [vmem:[#allocation4 + $0x84] ss:$16 sps:$4 sm:$0xff]   ;;  %v1520_v19 = vld [vmem:[#allocation4 + $0x48] ss:$16 sps:$4 sm:$0xff]   ;;  %v1528_v20 = vld [vmem:[#allocation4 + $0x6c] ss:$16 sps:$4 sm:$0xff]  }
  0x51   :  { %1446 = vmatprep.subr.bf16.mxu0 %v1786_v0  ;;  %399 = vmatpush1.bf16.msra.mxu1 %v1517_v9  ;;  %v1535_v21 = vld [vmem:[#allocation4 + $0x80] ss:$16 sps:$4 sm:$0xff]   ;;  %v1536_v22 = vld [vmem:[#allocation4 + $0xa4] ss:$16 sps:$4 sm:$0xff]   ;;  %v1526_v23 = vld [vmem:[#allocation4 + $0x68] ss:$16 sps:$4 sm:$0xff]  }
  0x52   :  { %400 = vmatprep.subr.bf16.mxu1 %v1518_v10  ;;  %v1534_v24 = vld [vmem:[#allocation4 + $0x8c] ss:$16 sps:$4 sm:$0xff]   ;;  %v1541_v25 = vld [vmem:[#allocation4 + $0xa0] ss:$16 sps:$4 sm:$0xff]   ;;  %v1542_v26 = vld [vmem:[#allocation4 + $0xc4] ss:$16 sps:$4 sm:$0xff]  }
  0x53   :  { %v1532_v27 = vld [vmem:[#allocation4 + $0x88] ss:$16 sps:$4 sm:$0xff]   ;;  %v1540_v28 = vld [vmem:[#allocation4 + $0xac] ss:$16 sps:$4 sm:$0xff]   ;;  %v1547_v29 = vld [vmem:[#allocation4 + $0xc0] ss:$16 sps:$4 sm:$0xff]  }
  0x54   :  { %1447 = vmatpush3.bf16.msra.mxu0 %v1505_v4  ;;  %v1538_v30 = vld [vmem:[#allocation4 + $0xa8] ss:$16 sps:$4 sm:$0xff]   ;;  %v1546_v31 = vld [vmem:[#allocation4 + $0xcc] ss:$16 sps:$4 sm:$0xff]   ;;  %v1548_v33 = vld [vmem:[#allocation4 + $0xe4] ss:$16 sps:$4 sm:$0xff]  }
  0x55   :  { %437 = vmatprep.subr.bf16.mxu0 %v1510_v7  ;;  %401 = vmatpush1.bf16.msra.mxu1 %v1523_v13  ;;  %v1544_v32 = vld [vmem:[#allocation4 + $0xc8] ss:$16 sps:$4 sm:$0xff]   ;;  %v1552_v34 = vld [vmem:[#allocation4 + $0xec] ss:$16 sps:$4 sm:$0xff]   ;;  %v1553_v36 = vld [vmem:[#allocation4 + $0xe0] ss:$16 sps:$4 sm:$0xff]  }
  0x56   :  { %402 = vmatprep.subr.bf16.mxu1 %v1524_v14  ;;  %v1550_v35 = vld [vmem:[#allocation4 + $0xe8] ss:$16 sps:$4 sm:$0xff]   ;;  %v1788_v37 = vmov 0   ;;  %v1555_v46 = vld [vmem:[%s2056_s6 + $0x8] sm:$0xff]   ;;  %v1557_v48 = vld [vmem:[%s2056_s6 + $0x18] sm:$0xff]  }
  0x57   :  { %1449 = vmatmul.mubr.msk.bf16.vlgmr.msra.gmra.mrb[0].mxu0 %vm137_vm1, %v105_v8  ;;  %428 = vmatprep.mubr.bf16.mxu1 %v1788_v37  ;;  %v1297_v38 = vld [vmem:[%s2053_s3] ss:$0 sm:$0xff]  ;;  %v1556_v47 = vld [vmem:[%s2056_s6 + $0x10] sm:$0xff]   ;;  %v1559_v50 = vld [vmem:[%s2056_s6 + $0x28] sm:$0xff]  }
  0x58   :  { %438 = vmatpush1.bf16.msra.mxu0 %v1508_v11  ;;  %469 = vmatprep.mubr.bf16.mxu0 %v1788_v37  ;;  %v1554_v43 = vld [vmem:[%s2056_s6] sm:$0xff]   ;;  %v1560_v51 = vld [vmem:[%s2056_s6 + $0x30] sm:$0xff]   ;;  %v1561_v52 = vld [vmem:[%s2056_s6 + $0x38] sm:$0xff]  }
  0x59   :  { %439 = vmatprep.subr.bf16.mxu0 %v1516_v12  ;;  %403 = vmatpush1.bf16.msra.mxu1 %v1529_v17  ;;  %v1558_v49 = vld [vmem:[%s2056_s6 + $0x20] sm:$0xff]   ;;  %v1562_v53 = vld [vmem:[#allocation6] ss:$16 sps:$4 sm:$0xff]   ;;  %v1564_v54 = vld [vmem:[#allocation6 + $0x4] ss:$16 sps:$4 sm:$0xff]  }
  0x5a   :  { %404 = vmatprep.subr.bf16.mxu1 %v1530_v18  ;;  %v1567_v55 = vld [vmem:[#allocation6 + $0xc] ss:$16 sps:$4 sm:$0xff]   ;;  %v1570_v56 = vld [vmem:[#allocation6 + $0x24] ss:$16 sps:$4 sm:$0xff]   ;;  %v1568_v57 = vld [vmem:[#allocation6 + $0x20] ss:$16 sps:$4 sm:$0xff]  }
  0x5b   :  { %v1576_v58 = vld [vmem:[#allocation6 + $0x44] ss:$16 sps:$4 sm:$0xff]   ;;  %v1574_v59 = vld [vmem:[#allocation6 + $0x40] ss:$16 sps:$4 sm:$0xff]   ;;  %v1988_v18 = vld [vmem:[%s2055_s5] sm:$0xf] }
  0x5c   :  { %440 = vmatpush1.bf16.msra.mxu0 %v1514_v15  ;;  %v1582_v60 = vld [vmem:[#allocation6 + $0x64] ss:$16 sps:$4 sm:$0xff]   ;;  %v1580_v61 = vld [vmem:[#allocation6 + $0x60] ss:$16 sps:$4 sm:$0xff]   ;;  %v216_v15 = vlaneseq  ;;  %v1583_v37 = vld [vmem:[#allocation6 + $0x68] ss:$16 sps:$4 sm:$0xff]  }
  0x5d   :  { %441 = vmatprep.subr.bf16.mxu0 %v1522_v16  ;;  %405 = vmatpush1.bf16.msra.mxu1 %v1535_v21  ;;  %v1588_v62 = vld [vmem:[#allocation6 + $0x84] ss:$16 sps:$4 sm:$0xff]   ;;  %v1586_v63 = vld [vmem:[#allocation6 + $0x80] ss:$16 sps:$4 sm:$0xff]  }
  0x5e   :  { %406 = vmatprep.subr.bf16.mxu1 %v1536_v22  ;;  %v1594_v1 = vld [vmem:[#allocation6 + $0xa4] ss:$16 sps:$4 sm:$0xff]   ;;  %v1592_v2 = vld [vmem:[#allocation6 + $0xa0] ss:$16 sps:$4 sm:$0xff]   ;;  %v1982_v16 = vshrl.u32 %v216_v15, 7 }
  0x5f   :  { %v1600_v3 = vld [vmem:[#allocation6 + $0xc4] ss:$16 sps:$4 sm:$0xff]   ;;  %v1598_v4 = vld [vmem:[#allocation6 + $0xc0] ss:$16 sps:$4 sm:$0xff]  }
  0x60   :  { %442 = vmatpush1.bf16.msra.mxu0 %v1520_v19  ;;  %v1606_v5 = vld [vmem:[#allocation6 + $0xe4] ss:$16 sps:$4 sm:$0xff]   ;;  %v1604_v6 = vld [vmem:[#allocation6 + $0xe0] ss:$16 sps:$4 sm:$0xff]   ;;  %v218_v17 = vsub.s32 0, %v1982_v16 }
  0x61   :  { %443 = vmatprep.subr.bf16.mxu0 %v1528_v20  ;;  %407 = vmatpush1.bf16.msra.mxu1 %v1541_v25  ;;  %v1612_v7 = vld [vmem:[#allocation6 + $0x104] ss:$16 sps:$4 sm:$0xff]   ;;  %v1610_v8 = vld [vmem:[#allocation6 + $0x100] ss:$16 sps:$4 sm:$0xff]  }
  0x62   :  { %408 = vmatprep.subr.bf16.mxu1 %v1542_v26  ;;  %v1618_v9 = vld [vmem:[#allocation6 + $0x124] ss:$16 sps:$4 sm:$0xff]   ;;  %v1616_v10 = vld [vmem:[#allocation6 + $0x120] ss:$16 sps:$4 sm:$0xff]   ;;  %v219_v19 = vrot.slane %v1988_v18, %v218_v17 }
  0x63   :  { %v1624_v11 = vld [vmem:[#allocation6 + $0x144] ss:$16 sps:$4 sm:$0xff]   ;;  %v1622_v12 = vld [vmem:[#allocation6 + $0x140] ss:$16 sps:$4 sm:$0xff]  }
  0x64   :  { %444 = vmatpush1.bf16.msra.mxu0 %v1526_v23  ;;  %v1630_v13 = vld [vmem:[#allocation6 + $0x164] ss:$16 sps:$4 sm:$0xff]   ;;  %v1628_v14 = vld [vmem:[#allocation6 + $0x160] ss:$16 sps:$4 sm:$0xff]  }
  0x65   :  { %445 = vmatprep.subr.bf16.mxu0 %v1534_v24  ;;  %409 = vmatpush1.bf16.msra.mxu1 %v1547_v29 }
  0x66   :  { %410 = vmatprep.subr.bf16.mxu1 %v1548_v33  ;;  %v1571_v33 = vld [vmem:[#allocation6 + $0x28] ss:$16 sps:$4 sm:$0xff]  }
  0x68   :  { %446 = vmatpush1.bf16.msra.mxu0 %v1532_v27 }
  0x69   :  { %447 = vmatprep.subr.bf16.mxu0 %v1540_v28  ;;  %411 = vmatpush1.bf16.msra.mxu1 %v1553_v36  ;;  %v1585_v36 = vld [vmem:[#allocation6 + $0x6c] ss:$16 sps:$4 sm:$0xff]  }
  0x6a   :  { %1452 = vmatprep.subr.bf16.mxu1 %v1786_v0 }
  0x6c   :  { %448 = vmatpush1.bf16.msra.mxu0 %v1538_v30  ;;  %v1565_v30 = vld [vmem:[#allocation6 + $0x8] ss:$16 sps:$4 sm:$0xff]  }
  0x6d   :  { %449 = vmatprep.subr.bf16.mxu0 %v1546_v31 }
  0x70   :  { %450 = vmatpush1.bf16.msra.mxu0 %v1544_v32  ;;  %v1573_v32 = vld [vmem:[#allocation6 + $0x2c] ss:$16 sps:$4 sm:$0xff]  }
  0x71   :  { %451 = vmatprep.subr.bf16.mxu0 %v1552_v34  ;;  %v1579_v34 = vld [vmem:[#allocation6 + $0x4c] ss:$16 sps:$4 sm:$0xff]  }
  0x74   :  { %452 = vmatpush1.bf16.msra.mxu0 %v1550_v35  ;;  %v1577_v35 = vld [vmem:[#allocation6 + $0x48] ss:$16 sps:$4 sm:$0xff]  }
  0x75   :  { %1001 = vmatprep.subr.bf16.mxu0 %v1564_v54  ;;  %v1636_v54 = vld [vmem:[#allocation6 + $0x184] ss:$16 sps:$4 sm:$0xff]  }
 0x12a   :  { %v175_v39 = vpop.f32.mrb[0].mxu0 }
 0x12b   :  { %v176_v40 = vadd.f32 %v1297_v38, %v175_v39  ;;  %v1450_v41 = vpop.f32.mrb[1].mxu0  ;;  %v1591_v38 = vld [vmem:[#allocation6 + $0x8c] ss:$16 sps:$4 sm:$0xff]   ;;  %v1589_v39 = vld [vmem:[#allocation6 + $0x88] ss:$16 sps:$4 sm:$0xff]  }
 0x12c   :  { %v178_v42 = vpop.f32.mrb[2].mxu0  ;;  %v1595_v41 = vld [vmem:[#allocation6 + $0xa8] ss:$16 sps:$4 sm:$0xff]  }
 0x12d   :  { %v181_v44 = vpack.c.bf16 %v176_v40, %v176_v40  ;;  %v1451_v45 = vpop.f32.mrb[3].mxu0  ;;  %v1597_v40 = vld [vmem:[#allocation6 + $0xac] ss:$16 sps:$4 sm:$0xff]  }
 0x12e   :  { %v1603_v42 = vld [vmem:[#allocation6 + $0xcc] ss:$16 sps:$4 sm:$0xff]   ;;  %v1607_v45 = vld [vmem:[#allocation6 + $0xe8] ss:$16 sps:$4 sm:$0xff]  }
 0x12f   :  { %429 = vmatmul.mubr.bf16.vlgmr.msra.gmra.mrb[0].mxu1 %v181_v44  ;;  %470 = vmatmul.mubr.bf16.vlgmr.msra.gmra.mrb[4].mxu0 %v181_v44  ;;  %v1609_v44 = vld [vmem:[#allocation6 + $0xec] ss:$16 sps:$4 sm:$0xff]  }
 0x130   :  { %1453 = vmatpush3.bf16.msra.mxu1 %v1554_v43  ;;  %1468 = vmatprep.mubr.msk.bf16.mxu1 %vm1787_vm0, %v1786_v0  ;;  %v1601_v43 = vld [vmem:[#allocation6 + $0xc8] ss:$16 sps:$4 sm:$0xff]  }
 0x131   :  { %1454 = vmatprep.subr.bf16.mxu1 %v1786_v0  ;;  %1002 = vmatpush1.bf16.msra.mxu0 %v1562_v53  ;;  %v1631_v53 = vld [vmem:[#allocation6 + $0x168] ss:$16 sps:$4 sm:$0xff]  }
 0x132   :  { %1003 = vmatprep.subr.bf16.mxu0 %v1570_v56  ;;  %v1634_v56 = vld [vmem:[#allocation6 + $0x180] ss:$16 sps:$4 sm:$0xff]  }
 0x134   :  { %1455 = vmatpush3.bf16.msra.mxu1 %v1555_v46  ;;  %v1615_v46 = vld [vmem:[#allocation6 + $0x10c] ss:$16 sps:$4 sm:$0xff]  }
 0x135   :  { %1456 = vmatprep.subr.bf16.mxu1 %v1786_v0  ;;  %1004 = vmatpush1.bf16.msra.mxu0 %v1568_v57  ;;  %v1637_v57 = vld [vmem:[#allocation6 + $0x188] ss:$16 sps:$4 sm:$0xff]  }
 0x136   :  { %1005 = vmatprep.subr.bf16.mxu0 %v1576_v58  ;;  %v1642_v58 = vld [vmem:[#allocation6 + $0x1a4] ss:$16 sps:$4 sm:$0xff]  }
 0x138   :  { %1457 = vmatpush3.bf16.msra.mxu1 %v1556_v47  ;;  %v1613_v47 = vld [vmem:[#allocation6 + $0x108] ss:$16 sps:$4 sm:$0xff]  }
 0x139   :  { %1458 = vmatprep.subr.bf16.mxu1 %v1786_v0  ;;  %1006 = vmatpush1.bf16.msra.mxu0 %v1574_v59  ;;  %v1645_v59 = vld [vmem:[#allocation6 + $0x1ac] ss:$16 sps:$4 sm:$0xff]  }
 0x13a   :  { %1007 = vmatprep.subr.bf16.mxu0 %v1582_v60  ;;  %v1640_v60 = vld [vmem:[#allocation6 + $0x1a0] ss:$16 sps:$4 sm:$0xff]  }
 0x13c   :  { %1459 = vmatpush3.bf16.msra.mxu1 %v1557_v48  ;;  %v1621_v48 = vld [vmem:[#allocation6 + $0x12c] ss:$16 sps:$4 sm:$0xff]  }
 0x13d   :  { %1460 = vmatprep.subr.bf16.mxu1 %v1786_v0  ;;  %1008 = vmatpush1.bf16.msra.mxu0 %v1580_v61  ;;  %v1643_v61 = vld [vmem:[#allocation6 + $0x1a8] ss:$16 sps:$4 sm:$0xff]  }
 0x13e   :  { %1009 = vmatprep.subr.bf16.mxu0 %v1588_v62  ;;  %v1648_v62 = vld [vmem:[#allocation6 + $0x1c4] ss:$16 sps:$4 sm:$0xff]  }
 0x140   :  { %1461 = vmatpush3.bf16.msra.mxu1 %v1558_v49  ;;  %v1619_v49 = vld [vmem:[#allocation6 + $0x128] ss:$16 sps:$4 sm:$0xff]  }
 0x141   :  { %1462 = vmatprep.subr.bf16.mxu1 %v1786_v0  ;;  %1010 = vmatpush1.bf16.msra.mxu0 %v1586_v63  ;;  %v1651_v63 = vld [vmem:[#allocation6 + $0x1cc] ss:$16 sps:$4 sm:$0xff]  }
 0x142   :  { %1011 = vmatprep.subr.bf16.mxu0 %v1594_v1  ;;  %v1646_v1 = vld [vmem:[#allocation6 + $0x1c0] ss:$16 sps:$4 sm:$0xff]  }
 0x144   :  { %1463 = vmatpush3.bf16.msra.mxu1 %v1559_v50  ;;  %v1627_v50 = vld [vmem:[#allocation6 + $0x14c] ss:$16 sps:$4 sm:$0xff]  }
 0x145   :  { %1464 = vmatprep.subr.bf16.mxu1 %v1786_v0  ;;  %1012 = vmatpush1.bf16.msra.mxu0 %v1592_v2  ;;  %v1649_v2 = vld [vmem:[#allocation6 + $0x1c8] ss:$16 sps:$4 sm:$0xff]  }
 0x146   :  { %1013 = vmatprep.subr.bf16.mxu0 %v1600_v3  ;;  %v1654_v3 = vld [vmem:[#allocation6 + $0x1e4] ss:$16 sps:$4 sm:$0xff]  }
 0x148   :  { %1465 = vmatpush3.bf16.msra.mxu1 %v1560_v51  ;;  %v1625_v51 = vld [vmem:[#allocation6 + $0x148] ss:$16 sps:$4 sm:$0xff]  }
 0x149   :  { %1466 = vmatprep.subr.bf16.mxu1 %v1786_v0  ;;  %1014 = vmatpush1.bf16.msra.mxu0 %v1598_v4  ;;  %v1657_v4 = vld [vmem:[#allocation6 + $0x1ec] ss:$16 sps:$4 sm:$0xff]  }
 0x14a   :  { %1015 = vmatprep.subr.bf16.mxu0 %v1606_v5  ;;  %v1652_v5 = vld [vmem:[#allocation6 + $0x1e0] ss:$16 sps:$4 sm:$0xff]  }
 0x14c   :  { %1467 = vmatpush3.bf16.msra.mxu1 %v1561_v52  ;;  %v1633_v52 = vld [vmem:[#allocation6 + $0x16c] ss:$16 sps:$4 sm:$0xff]  }
 0x14d   :  { %1042 = vmatprep.subr.bf16.mxu1 %v1567_v55  ;;  %1016 = vmatpush1.bf16.msra.mxu0 %v1604_v6  ;;  %v1639_v55 = vld [vmem:[#allocation6 + $0x18c] ss:$16 sps:$4 sm:$0xff]   ;;  %v1655_v6 = vld [vmem:[#allocation6 + $0x1e8] ss:$16 sps:$4 sm:$0xff]  }
 0x14e   :  { %1017 = vmatprep.subr.bf16.mxu0 %v1612_v7  ;;  %v2002_v7 = vld [vmem:[%s2051_s1] sm:$0xff] }
 0x151   :  { %1018 = vmatpush1.bf16.msra.mxu0 %v1610_v8  ;;  %v594_v8 = vpack.c.bf16 %v2002_v7, %v2002_v7 }
 0x152   :  { %1019 = vmatprep.subr.bf16.mxu0 %v1618_v9  ;;  %v1334_v9 = vld [vmem:[%s2057_s7] ss:$0 sm:$0xff] }
 0x153   :  { %1033 = vmatprep.mubr.bf16.mxu0 %v594_v8 }
 0x155   :  { %1020 = vmatpush1.bf16.msra.mxu0 %v1616_v10 }
 0x156   :  { %1021 = vmatprep.subr.bf16.mxu0 %v1624_v11 }
 0x159   :  { %1022 = vmatpush1.bf16.msra.mxu0 %v1622_v12 }
 0x15a   :  { %1023 = vmatprep.subr.bf16.mxu0 %v1630_v13 }
 0x15d   :  { %1024 = vmatpush1.bf16.msra.mxu0 %v1628_v14 }
 0x15e   :  { %1025 = vmatprep.subr.bf16.mxu0 %v1636_v54 }
 0x161   :  { %1026 = vmatpush1.bf16.msra.mxu0 %v1634_v56 }
 0x162   :  { %1027 = vmatprep.subr.bf16.mxu0 %v1642_v58 }
 0x165   :  { %1028 = vmatpush1.bf16.msra.mxu0 %v1640_v60 }
 0x166   :  { %1029 = vmatprep.subr.bf16.mxu0 %v1648_v62  ;;  %v1658_v62 = vld [vmem:[#allocation7] sm:$0xff]  }
 0x169   :  { %1030 = vmatpush1.bf16.msra.mxu0 %v1646_v1 }
 0x16a   :  { %1031 = vmatprep.subr.bf16.mxu0 %v1654_v3 }
 0x16d   :  { %1032 = vmatpush1.bf16.msra.mxu0 %v1652_v5  ;;  %v1660_v5 = vld [vmem:[#allocation7 + $0x10] sm:$0xff]  }
 0x16e   :  { %1472 = vmatprep.subr.bf16.mxu0 %v1786_v0 }
 0x202   :  { %v430_v20 = vpop.f32.mrb[0].mxu1  ;;  %v1993_v21 = vpop.f32.mrb[4].mxu0 }
 0x203   :  { %v431_v22 = vadd.f32 %v430_v20, %v219_v19  ;;  %v1995_v23 = vpop.f32.mrb[1].mxu1  ;;  %v1997_v24 = vpop.f32.mrb[5].mxu0 }
 0x204   :  { %v434_v25 = vpop.f32.mrb[2].mxu1  ;;  %v475_v26 = vpop.f32.mrb[6].mxu0 }
 0x205   :  { %v478_v27 = vmax.f32 %v431_v22, 0.0  ;;  %v435_v28 = vpop.f32.mrb[3].mxu1  ;;  %v476_v29 = vpop.f32.mrb[7].mxu0  ;;  %v222_v22 = vsub.s32 1, %v1982_v16  ;;  %v230_v25 = vsub.s32 3, %v1982_v16  ;;  %v226_v26 = vsub.s32 2, %v1982_v16 }
 0x207   :  { %v479_v31 = vpack.c.bf16 %v478_v27, %v478_v27  ;;  %v659_v27 = vld [vmem:[%s2059_s9] sm:$0xf]  ;;  %v223_v28 = vrot.slane %v1988_v18, %v222_v22  ;;  %v231_v29 = vrot.slane %v1988_v18, %v230_v25 }
 0x209   :  { %1469 = vmatmul.mubr.bf16.vlgmr.msra.gmra.mrb[4].mxu1 %v479_v31  ;;  %v672_v31 = vrot.slane %v659_v27, %v226_v26 }
 0x20a   :  { %1043 = vmatpush1.bf16.msra.mxu1 %v1565_v30  ;;  %1074 = vmatprep.mubr.bf16.mxu1 %v594_v8  ;;  %v664_v30 = vrot.slane %v659_v27, %v218_v17  ;;  %v1663_v8 = vld [vmem:[#allocation7 + $0x28] sm:$0xff]  }
 0x20b   :  { %1044 = vmatprep.subr.bf16.mxu1 %v1573_v32  ;;  %v227_v32 = vrot.slane %v1988_v18, %v226_v26 }
 0x20e   :  { %1045 = vmatpush1.bf16.msra.mxu1 %v1571_v33  ;;  %v668_v33 = vrot.slane %v659_v27, %v222_v22  ;;  %v1410_v22 = vld [vmem:[%s2061_s11] ss:$0 sm:$0xff] }
 0x20f   :  { %1046 = vmatprep.subr.bf16.mxu1 %v1579_v34 }
 0x212   :  { %1047 = vmatpush1.bf16.msra.mxu1 %v1577_v35 }
 0x213   :  { %1048 = vmatprep.subr.bf16.mxu1 %v1585_v36  ;;  %v433_v36 = vadd.f32 %v1995_v23, %v223_v28 }
 0x216   :  { %1049 = vmatpush1.bf16.msra.mxu1 %v1583_v37  ;;  %v474_v37 = vadd.f32 %v1997_v24, %v231_v29 }
 0x217   :  { %1050 = vmatprep.subr.bf16.mxu1 %v1591_v38 }
 0x21a   :  { %1051 = vmatpush1.bf16.msra.mxu1 %v1589_v39 }
 0x21b   :  { %1052 = vmatprep.subr.bf16.mxu1 %v1597_v40 }
 0x21e   :  { %1053 = vmatpush1.bf16.msra.mxu1 %v1595_v41 }
 0x21f   :  { %1054 = vmatprep.subr.bf16.mxu1 %v1603_v42  ;;  %v472_v42 = vadd.f32 %v1993_v21, %v227_v32 }
 0x222   :  { %1055 = vmatpush1.bf16.msra.mxu1 %v1601_v43 }
 0x223   :  { %1056 = vmatprep.subr.bf16.mxu1 %v1609_v44 }
 0x226   :  { %1057 = vmatpush1.bf16.msra.mxu1 %v1607_v45 }
 0x227   :  { %1058 = vmatprep.subr.bf16.mxu1 %v1615_v46 }
 0x22a   :  { %1059 = vmatpush1.bf16.msra.mxu1 %v1613_v47 }
 0x22b   :  { %1060 = vmatprep.subr.bf16.mxu1 %v1621_v48 }
 0x22e   :  { %1061 = vmatpush1.bf16.msra.mxu1 %v1619_v49 }
 0x22f   :  { %1062 = vmatprep.subr.bf16.mxu1 %v1627_v50 }
 0x232   :  { %1063 = vmatpush1.bf16.msra.mxu1 %v1625_v51  ;;  %v676_v51 = vrot.slane %v659_v27, %v230_v25 }
 0x233   :  { %1064 = vmatprep.subr.bf16.mxu1 %v1633_v52 }
 0x236   :  { %1065 = vmatpush1.bf16.msra.mxu1 %v1631_v53 }
 0x237   :  { %1066 = vmatprep.subr.bf16.mxu1 %v1639_v55 }
 0x23a   :  { %1067 = vmatpush1.bf16.msra.mxu1 %v1637_v57 }
 0x23b   :  { %1068 = vmatprep.subr.bf16.mxu1 %v1645_v59 }
 0x23e   :  { %1069 = vmatpush1.bf16.msra.mxu1 %v1643_v61 }
 0x23f   :  { %1070 = vmatprep.subr.bf16.mxu1 %v1651_v63  ;;  %v1659_v63 = vld [vmem:[#allocation7 + $0x8] sm:$0xff]  }
 0x242   :  { %1071 = vmatpush1.bf16.msra.mxu1 %v1649_v2 }
 0x243   :  { %1072 = vmatprep.subr.bf16.mxu1 %v1657_v4 }
 0x246   :  { %1073 = vmatpush1.bf16.msra.mxu1 %v1655_v6  ;;  %v1661_v6 = vld [vmem:[#allocation7 + $0x18] sm:$0xff]  }
 0x2dc   :  { %v585_v10 = vpop.f32.mrb[4].mxu1 }
 0x2dd   :  { %v586_v11 = vadd.f32 %v1334_v9, %v585_v10  ;;  %v1470_v12 = vpop.f32.mrb[5].mxu1  ;;  %v1664_v9 = vld [vmem:[#allocation7 + $0x30] sm:$0xff]   ;;  %v1665_v10 = vld [vmem:[#allocation7 + $0x38] sm:$0xff]  }
 0x2de   :  { %v588_v13 = vpop.f32.mrb[6].mxu1 }
 0x2df   :  { %1666 = vtanh.f32 %v586_v11  ;;  %v1471_v14 = vpop.f32.mrb[7].mxu1 }
 0x2e9   :  { %v1667_v19 = vpop.eup %1666 }
 0x2ea   :  { %v593_v20 = vpack.c.bf16 %v1667_v19, %v1667_v19  ;;  %v1409_v19 = vld [vmem:[%s2060_s10] ss:$0 sm:$0xff] }
 0x2ec   :  { %1034 = vmatmul.mubr.bf16.vlgmr.msra.gmra.mrb[8].mxu0 %v593_v20  ;;  %1075 = vmatmul.mubr.bf16.vlgmr.msra.gmra.mrb[8].mxu1 %v593_v20 }
 0x2ed   :  { %1488 = vmatprep.mubr.msk.bf16.mxu0 %vm1787_vm0, %v1786_v0  ;;  %1473 = vmatpush3.bf16.msra.mxu0 %v1658_v62 }
 0x2ee   :  { %1474 = vmatprep.subr.bf16.mxu0 %v1786_v0 }
 0x2f1   :  { %1475 = vmatpush3.bf16.msra.mxu0 %v1659_v63 }
 0x2f2   :  { %1476 = vmatprep.subr.bf16.mxu0 %v1786_v0 }
 0x2f5   :  { %1477 = vmatpush3.bf16.msra.mxu0 %v1660_v5 }
 0x2f6   :  { %1478 = vmatprep.subr.bf16.mxu0 %v1786_v0 }
 0x2f9   :  { %1479 = vmatpush3.bf16.msra.mxu0 %v1661_v6 }
 0x2fa   :  { %1480 = vmatprep.subr.bf16.mxu0 %v1786_v0 }
 0x3bf   :  { %v1035_v34 = vpop.f32.mrb[8].mxu0  ;;  %v1076_v35 = vpop.f32.mrb[8].mxu1 }
 0x3c0   :  { %v1036_v38 = vadd.f32 %v1035_v34, %v664_v30  ;;  %v1077_v39 = vadd.f32 %v1076_v35, %v672_v31  ;;  %v1037_v40 = vpop.f32.mrb[9].mxu0  ;;  %v1078_v41 = vpop.f32.mrb[9].mxu1 }
 0x3c1   :  { %v1038_v43 = vadd.f32 %v1037_v40, %v668_v33  ;;  %v1039_v44 = vpop.f32.mrb[10].mxu0  ;;  %v1080_v16 = vpop.f32.mrb[10].mxu1  ;;  %v1079_v53 = vadd.f32 %v1078_v41, %v676_v51  ;;  %v1248_v33 = vand.u32 127, %v216_v15 }
 0x3c2   :  { %v1083_v17 = vadd.f32 %v1036_v38, %v433_v36  ;;  %v1097_v45 = vadd.f32 %v1077_v39, %v474_v37  ;;  %v1040_v46 = vpop.f32.mrb[11].mxu0  ;;  %v1081_v18 = vpop.f32.mrb[11].mxu1 }
 0x3c3   :  { %v1090_v47 = vadd.f32 %v1038_v43, %v472_v42  ;;  %vm1278_vm5 = vcmp.eq.s32.totalorder %v1248_v33, 0  ;;  %vm1281_vm6 = vcmp.eq.s32.totalorder %v1248_v33, 1 }
 0x3c4   :  { %v1407_v48 = vmul.f32 -1.442695, %v1083_v17 }
 0x3c5   :  { %v1408_v49 = vmul.f32 -1.442695, %v1090_v47 }
 0x3c6   :  { %1668 = vpow2.f32 %v1407_v48 }
 0x3c7   :  { %1670 = vpow2.f32 %v1408_v49 }
 0x3d0   :  { %v1669_v23 = vpop.eup %1668 }
 0x3d1   :  { %v1087_v24 = vadd.f32 1.0, %v1669_v23  ;;  %v1671_v50 = vpop.eup %1670 }
 0x3d2   :  { %v1094_v52 = vadd.f32 1.0, %v1671_v50 }
 0x3d3   :  { %1672 = vrcp.f32 %v1087_v24 }
 0x3d4   :  { %1674 = vrcp.f32 %v1094_v52 }
 0x3dd   :  { %v1673_v21 = vpop.eup %1672 }
 0x3de   :  { %v1098_v54 = vmul.f32 %v1673_v21, %v1079_v53  ;;  %v1675_v56 = vpop.eup %1674 }
 0x3df   :  { %v1101_v57 = vsub.f32 1.0, %v1675_v56  ;;  %v1103_v60 = vmul.f32 %v1675_v56, %v2002_v7  ;;  %v1662_v7 = vld [vmem:[#allocation7 + $0x20] sm:$0xff]  }
 0x3e0   :  { %v1099_v55 = vadd.f32 %v1098_v54, %v1097_v45  ;;  %1481 = vmatpush3.bf16.msra.mxu0 %v1662_v7 }
 0x3e1   :  { %1482 = vmatprep.subr.bf16.mxu0 %v1786_v0 }
 0x3e2   :  { %1676 = vtanh.f32 %v1099_v55 }
 0x3e4   :  { %1483 = vmatpush3.bf16.msra.mxu0 %v1663_v8 }
 0x3e5   :  { %1484 = vmatprep.subr.bf16.mxu0 %v1786_v0 }
 0x3e8   :  { %1485 = vmatpush3.bf16.msra.mxu0 %v1664_v9 }
 0x3e9   :  { %1486 = vmatprep.subr.bf16.mxu0 %v1786_v0  ;;  %v1411_v0 = vld [vmem:[%s2063_s13] ss:$0 sm:$0xff] }
 0x3ec   :  { %v1677_v58 = vpop.eup %1676  ;;  %1487 = vmatpush3.bf16.msra.mxu0 %v1665_v10 }
 0x3ed   :  { %v1102_v59 = vmul.f32 %v1677_v58, %v1101_v57 }
 0x3ef   :  { %v1104_v61 = vadd.f32 %v1103_v60, %v1102_v59 }
 0x3f1   :  { %1105 = vadd.xlane.f32.xlu0 %v1104_v61  ;;  %1285 = vst [vmem:[%s2065_s15] sm:$0xff] %v1104_v61 }
 0x47e   :  { %v1106_v1 = vpop.xlane.xlu0 %1105 }
 0x47f   :  { %v1108_v2 = vmul.f32 0.0078125, %v1106_v1 }
 0x481   :  { %v1109_v3 = vsub.f32 %v1104_v61, %v1108_v2 }
 0x483   :  { %v1110_v4 = vmul.f32 %v1109_v3, %v1109_v3 }
 0x485   :  { %1111 = vadd.xlane.f32.xlu0 %v1110_v4 }
 0x512   :  { %v1112_v11 = vpop.xlane.xlu0 %1111 }
 0x513   :  { %v1113_v12 = vmul.f32 0.0078125, %v1112_v11 }
 0x515   :  { %v1114_v13 = vadd.f32 1e-05, %v1113_v12 }
 0x517   :  { %1678 = vrsqrt.f32 %v1114_v13 }
 0x521   :  { %v1679_v14 = vpop.eup %1678 }
 0x522   :  { %v1116_v20 = vmul.f32 %v1679_v14, %v1109_v3 }
 0x524   :  { %v1124_v25 = vmul.f32 %v1409_v19, %v1116_v20 }
 0x526   :  { %v1132_v26 = vadd.f32 %v1410_v22, %v1124_v25 }
 0x528   :  { %v1133_v27 = vpack.c.bf16 %v1132_v26, %v1132_v26 }
 0x52a   :  { %1489 = vmatmul.mubr.bf16.vlgmr.msra.gmra.mrb[12].mxu0 %v1133_v27 }
 0x5fd   :  { %v1239_v28 = vpop.f32.mrb[12].mxu0 }
 0x5fe   :  { %v1240_v29 = vadd.f32 %v1411_v0, %v1239_v28  ;;  %v1490_v30 = vpop.f32.mrb[13].mxu0 }
 0x5ff   :  { %v1242_v31 = vpop.f32.mrb[14].mxu0 }
 0x600   :  { %1245 = vmax.xlane.f32.xlu1 %v1240_v29  ;;  %v1491_v32 = vpop.f32.mrb[15].mxu0 }
 0x68d   :  { %v1246_v34 = vpop.xlane.xlu1 %1245 }
 0x68e   :  { %vm1249_vm2 = vcmp.eq.f32.partialorder %v1240_v29, %v1246_v34  ;;  %v1265_v35 = vsub.f32 %v1240_v29, %v1246_v34 }
 0x68f   :  { %v1250_v36 = vsel %vm1249_vm2, %v1248_v33, 128 }
 0x690   :  { %v1266_v37 = vmul.f32 1.442695, %v1265_v35  ;;  %v1252_v38 = vshra.s32 %v1250_v36, 16  ;;  %v1251_v41 = vand.u32 65535, %v1250_v36 }
 0x692   :  { %1680 = vpow2.f32 %v1266_v37  ;;  %v1254_v39 = vcvt.s32.f32 %v1252_v38  ;;  %v1253_v43 = vcvt.s32.f32 %v1251_v41 }
 0x694   :  { %1255 = vmin.xlane.f32.xlu1 %v1254_v39 }
 0x69c   :  { %v1681_v40 = vpop.eup %1680 }
 0x69d   :  { %1268 = vadd.xlane.f32.xlu0 %v1681_v40 }
 0x721   :  { %v1256_v42 = vpop.xlane.xlu1 %1255 }
 0x722   :  { %vm1257_vm3 = vcmp.eq.f32.partialorder %v1254_v39, %v1256_v42  ;;  %v1262_v45 = vcvt.f32.s32 %v1256_v42 }
 0x723   :  { %v1258_v44 = vsel %vm1257_vm3, %v1253_v43, inf }
 0x724   :  { %1259 = vmin.xlane.f32.xlu1 %v1258_v44  ;;  %v1263_v47 = vshll.u32 %v1262_v45, 16 }
 0x72a   :  { %v1269_v16 = vpop.xlane.xlu0 %1268 }
 0x72b   :  { %1682 = vlog2.f32 %v1269_v16 }
 0x735   :  { %v1683_v15 = vpop.eup %1682 }
 0x736   :  { %v1271_v17 = vmul.f32 0.6931472, %v1683_v15 }
 0x738   :  { %v1272_v18 = vadd.f32 %v1271_v17, %v1246_v34 }
 0x73a   :  { %v1274_v23 = vsub.f32 %v1240_v29, %v1272_v18 }
 0x7b1   :  { %v1260_v46 = vpop.xlane.xlu1 %1259 }
 0x7b2   :  { %v1261_v48 = vcvt.f32.s32 %v1260_v46 }
 0x7b4   :  { %v1264_v49 = vadd.s32 %v1263_v47, %v1261_v48 }
 0x7b6   :  { %vm1273_vm4 = vcmp.eq.s32.totalorder %v1248_v33, %v1264_v49  ;;  %v1279_v50 = vcvt.s32.f32 %v1264_v49 }
 0x7b7   :  { %v1275_v24 = vsel %vm1273_vm4, %v1274_v23, 0.0 }
 0x7b8   :  { %1276 = vadd.xlane.f32.xlu0 %v1275_v24  ;;  %v1280_v52 = vsel %vm1278_vm5, %v1279_v50, 0.0 }
 0x845   :  { %v1277_v51 = vpop.xlane.xlu0 %1276 }
 0x846   :  { %v1282_v53 = vsel %vm1281_vm6, %v1277_v51, 0.0 }
 0x847   :  { %v1283_v21 = vadd.f32 %v1282_v53, %v1280_v52 }
 0x849   :  { %1284 = vst [vmem:[%s2064_s14] sm:$0xff] %v1283_v21 }
 0x84a   :  { %1294 = vsyncpa [#allocation3], 1 }
 0x84b   :  { %1295 = vsyncpa [#allocation5], 1 }
 0x84c   :  { %1296 = vsyncpa [#allocation8], 1 }

</bundles_post_ra>
